<compile_context>
chip_gen: v7x
topology: tpu7x:2x2x1
jax: 0.10.0
libtpu: 0.0.40
codegen_flags: <defaults>
</compile_context>

<pallas_src>
import functools

import jax
import jax.numpy as jnp
from jax.experimental import pallas as pl
from jax.experimental.pallas import tpu as pltpu


def _round_up(x: int, m: int) -> int:
    return (x + m - 1) // m * m


def _apply_activation(h, activation):
    if activation == "relu":
        return jnp.maximum(h, 0.0)
    if activation == "gelu":
        return jax.nn.gelu(h)
    return h  # None -> identity (module default)


def _adapter_kernel_fused(x_ref, w1_ref, w2_ref, o_ref, *, activation):
    """Single output-column tile: both matmuls fused, no hidden scratch.

    x_ref : (tile_m, C_in)     input rows
    w1_ref: (C_in, C_hid_p)    whole 1st weight  (grid-invariant)
    w2_ref: (C_hid_p, C_out)   whole 2nd weight  (grid-invariant)
    o_ref : (tile_m, C_out)    output block
    """
    h = jnp.dot(x_ref[...], w1_ref[...], preferred_element_type=jnp.float32)
    h = _apply_activation(h, activation)
    o_ref[...] = jnp.dot(
        h.astype(w2_ref.dtype), w2_ref[...],
        preferred_element_type=jnp.float32).astype(o_ref.dtype)


def _adapter_kernel_tiled(x_ref, w1_ref, w2_ref, o_ref, h_ref, *, activation):
    """Multi output-column tiles: cache act(x @ w1) in VMEM scratch across j.

    x_ref : (tile_m, C_in)       input rows        (block depends on i only)
    w1_ref: (C_in, C_hid_p)      whole 1st weight  (grid-invariant)
    w2_ref: (C_hid_p, tile_n)    column slab of 2nd weight
    o_ref : (tile_m, tile_n)     output block
    h_ref : (tile_m, C_hid_p)    f32 VMEM scratch caching act(x @ w1)
    """
    @pl.when(pl.program_id(1) == 0)
    def _():
        h = jnp.dot(x_ref[...], w1_ref[...], preferred_element_type=jnp.float32)
        h_ref[...] = _apply_activation(h, activation)

    o_ref[...] = jnp.dot(
        h_ref[...].astype(w2_ref.dtype), w2_ref[...],
        preferred_element_type=jnp.float32).astype(o_ref.dtype)


def adapter_layer(x, w1, w2, activation=None, *, tile_m=512, tile_n=512):
    """Fused adapter: linear1 -> (activation) -> linear2 (bias=False).

    x : (..., C_in)
    w1: (C_in, C_hidden)    == torch linear1.weight.T
    w2: (C_hidden, C_out)   == torch linear2.weight.T
    activation: None | "relu" | "gelu"
    """
    if activation not in (None, "relu", "gelu"):
        raise ValueError(f"unsupported activation: {activation!r}")
    # TODO(synk): bias=True variant of the module is not implemented
    # (bias=False is the module default).

    orig_shape = x.shape
    c_in = orig_shape[-1]
    if w1.shape[0] != c_in or w2.shape[0] != w1.shape[1]:
        raise ValueError("weight shapes do not match input")
    c_hid = w1.shape[1]
    c_out = w2.shape[1]

    x2d = x.reshape(-1, c_in)              # collapse leading dims (free)
    n_rows = x2d.shape[0]

    x_itemsize = jnp.dtype(x.dtype).itemsize
    w_itemsize = jnp.dtype(w1.dtype).itemsize
    min_sublane = {4: 8, 2: 16, 1: 32}.get(x_itemsize, 8)

    # Hidden dim: zero-pad (weights only, exact math) to a lane multiple so
    # the MXU K dim of the second matmul is sane.
    c_hid_p = _round_up(c_hid, 128)
    w1p = jnp.pad(w1, ((0, 0), (0, c_hid_p - c_hid))) if c_hid_p != c_hid else w1

    # Output dim strategy:
    #  * 128-aligned (or very large) C_out -> pad to lane multiple and tile N
    #    (unmasked lane-dense stores, post-slice only if padding was needed).
    #  * small unaligned C_out (the typical adapter) -> write at true width
    #    with a full-extent lane block: avoids an extra HBM round-trip of a
    #    4x-padded output slab just to slice it back down.
    pad_out = (c_out % 128 == 0) or (c_out > 2048)
    if pad_out:
        c_out_p = _round_up(c_out, 128)
        tile_n = max(128, min(_round_up(tile_n, 128), c_out_p))
        c_out_p = _round_up(c_out_p, tile_n)
        grid_n = c_out_p // tile_n
    else:
        c_out_p = c_out
        tile_n = c_out
        grid_n = 1
    pad_hid = c_hid_p - c_hid
    pad_col = c_out_p - c_out
    w2p = jnp.pad(w2, ((0, pad_hid), (0, pad_col))) if (pad_hid or pad_col) else w2

    fused = grid_n == 1

    # Row tile: large by default, clamped to the problem size, rounded to the
    # dtype's minimum sublane multiple, and shrunk until the pipeline's VMEM
    # footprint fits the budget.  No row padding of x in HBM; the last partial
    # row tile is handled by Pallas boundary masking.
    tile_m = _round_up(max(min_sublane, min(tile_m, n_rows)), min_sublane)

    def _footprint(tm):
        w2_bufs = 1 if fused else 2
        fp = (2 * tm * c_in * x_itemsize                 # x, double buffered
              + c_in * c_hid_p * w_itemsize              # w1, single buffered
              + w2_bufs * c_hid_p * tile_n * w_itemsize  # w2
              + 2 * tm * tile_n * x_itemsize)            # out, double buffered
        if not fused:
            fp += tm * c_hid_p * 4                       # f32 hidden scratch
        return fp

    vmem_budget = 40 * 1024 * 1024
    while _footprint(tile_m) > vmem_budget and tile_m > min_sublane:
        tile_m = _round_up(max(min_sublane, tile_m // 2), min_sublane)

    grid_m = pl.cdiv(n_rows, tile_m)

    vmem_limit = int(min(64 * 1024 * 1024,
                         max(32 * 1024 * 1024,
                             int(_footprint(tile_m) * 1.5) + (2 << 20))))

    cost = pl.CostEstimate(
        flops=2 * n_rows * c_in * c_hid_p + 2 * n_rows * c_hid_p * c_out_p,
        transcendentals=(n_rows * c_hid if activation == "gelu" else 0),
        bytes_accessed=int(x2d.size * x_itemsize + w1p.size * w_itemsize
                           + w2p.size * w_itemsize
                           + n_rows * c_out_p * x_itemsize),
    )

    if fused:
        kernel = functools.partial(_adapter_kernel_fused, activation=activation)
        grid_spec = pltpu.PrefetchScalarGridSpec(
            num_scalar_prefetch=0,
            grid=(grid_m,),
            in_specs=[
                pl.BlockSpec((tile_m, c_in), lambda i: (i, 0)),
                # Grid-invariant weights: single-buffered (no 2x VMEM).
                pl.BlockSpec((c_in, c_hid_p), lambda i: (0, 0),
                             pipeline_mode=pl.Buffered(1)),
                pl.BlockSpec((c_hid_p, tile_n), lambda i: (0, 0),
                             pipeline_mode=pl.Buffered(1)),
            ],
            out_specs=pl.BlockSpec((tile_m, tile_n), lambda i: (i, 0)),
            scratch_shapes=(),
        )
        dims = ("parallel",)
    else:
        kernel = functools.partial(_adapter_kernel_tiled, activation=activation)
        grid_spec = pltpu.PrefetchScalarGridSpec(
            num_scalar_prefetch=0,
            grid=(grid_m, grid_n),
            in_specs=[
                pl.BlockSpec((tile_m, c_in), lambda i, j: (i, 0)),
                pl.BlockSpec((c_in, c_hid_p), lambda i, j: (0, 0),
                             pipeline_mode=pl.Buffered(1)),
                pl.BlockSpec((c_hid_p, tile_n), lambda i, j: (0, j)),
            ],
            out_specs=pl.BlockSpec((tile_m, tile_n), lambda i, j: (i, j)),
            scratch_shapes=[pltpu.VMEM((tile_m, c_hid_p), jnp.float32)],
        )
        dims = ("parallel", "arbitrary")

    out2d = pl.pallas_call(
        kernel,
        out_shape=jax.ShapeDtypeStruct((n_rows, c_out_p), x.dtype),
        grid_spec=grid_spec,
        compiler_params=pltpu.CompilerParams(
            dimension_semantics=dims,
            vmem_limit_bytes=vmem_limit),
        cost_estimate=cost,
    )(x2d, w1p, w2p)

    if c_out_p != c_out:
        out2d = out2d[:, :c_out]
    return out2d.reshape(*orig_shape[:-1], c_out)


def _init_linear_weight(key, fan_in, fan_out):
    # Mimics torch.nn.Linear default init: U(-1/sqrt(fan_in), +1/sqrt(fan_in)),
    # already transposed to (fan_in, fan_out).
    bound = 1.0 / (fan_in ** 0.5)
    return jax.random.uniform(key, (fan_in, fan_out), jnp.float32,
                              minval=-bound, maxval=bound)


if __name__ == "__main__":
    batch, seq = 2, 8
    input_channels, hidden_channels, output_channels = 32, 16, 32

    key = jax.random.PRNGKey(0)
    kx, k1, k2 = jax.random.split(key, 3)

    x = jax.random.normal(kx, (batch, seq, input_channels), jnp.float32)
    w1 = _init_linear_weight(k1, input_channels, hidden_channels)
    w2 = _init_linear_weight(k2, hidden_channels, output_channels)

    # Module default (no activation), ReLU, GELU, and bf16-operand fast path.
    out_none = adapter_layer(x, w1, w2, activation=None)
    out_relu = adapter_layer(x, w1, w2, activation="relu")
    out_gelu = adapter_layer(x, w1, w2, activation="gelu")
    out_bf16 = adapter_layer(x.astype(jnp.bfloat16),
                             w1.astype(jnp.bfloat16),
                             w2.astype(jnp.bfloat16), activation="relu")
    jax.block_until_ready((out_none, out_relu, out_gelu, out_bf16))

    # Pure-JAX references.
    ref_none = (x @ w1) @ w2
    ref_relu = jnp.maximum(x @ w1, 0.0) @ w2
    ref_gelu = jax.nn.gelu(x @ w1) @ w2

    assert out_none.shape == (batch, seq, output_channels)
    assert out_relu.shape == (batch, seq, output_channels)
    assert jnp.allclose(out_none, ref_none, atol=1e-5, rtol=1e-5)
    assert jnp.allclose(out_relu, ref_relu, atol=1e-5, rtol=1e-5)
    assert jnp.allclose(out_gelu, ref_gelu, atol=1e-4, rtol=1e-4)
    assert jnp.allclose(out_bf16.astype(jnp.float32), ref_relu,
                        atol=1e-1, rtol=1e-1)

    print("KERNEL_OK")
</pallas_src>

<mosaic_0001>
module attributes {stable_mosaic.version = 11 : i64} {
  func.func @_adapter_kernel_fused(%arg0: i32, %arg1: memref<16x32xf32, #tpu.memory_space<vmem>>, %arg2: memref<32x128xf32, #tpu.memory_space<vmem>>, %arg3: memref<128x32xf32, #tpu.memory_space<vmem>>, %arg4: memref<16x32xf32, #tpu.memory_space<vmem>>) attributes {dimension_semantics = [#tpu.dimension_semantics<parallel>], iteration_bounds = array<i64: 1>, scalar_prefetch = 0 : i64, scratch_operands = 0 : i64, tpu.core_type = #tpu.core_type<tc>, window_params = [{transform_indices = @transform_0, window_bounds = array<i64: 16, 32>}, {pipeline_mode = #tpu.pipeline_mode<synchronous>, transform_indices = @transform_1, window_bounds = array<i64: 32, 128>}, {pipeline_mode = #tpu.pipeline_mode<synchronous>, transform_indices = @transform_2, window_bounds = array<i64: 128, 32>}, {transform_indices = @transform_3, window_bounds = array<i64: 16, 32>}]} {
    %c0 = arith.constant 0 : index
    %c0_0 = arith.constant 0 : index
    %0 = vector.load %arg1[%c0, %c0_0] : memref<16x32xf32, #tpu.memory_space<vmem>>, vector<16x32xf32>
    %c0_1 = arith.constant 0 : index
    %c0_2 = arith.constant 0 : index
    %1 = vector.load %arg2[%c0_1, %c0_2] : memref<32x128xf32, #tpu.memory_space<vmem>>, vector<32x128xf32>
    %cst = arith.constant dense<0.000000e+00> : vector<16x128xf32>
    %2 = tpu.matmul %0, %1, %cst {dimension_numbers = #tpu.dot_dimension_numbers<[1], [0], [0], [1], [0, 0, 1, 1], [], []>} : vector<16x32xf32>, vector<32x128xf32>, vector<16x128xf32> -> vector<16x128xf32>
    %c0_3 = arith.constant 0 : index
    %c0_4 = arith.constant 0 : index
    %3 = vector.load %arg3[%c0_3, %c0_4] : memref<128x32xf32, #tpu.memory_space<vmem>>, vector<128x32xf32>
    %cst_5 = arith.constant dense<0.000000e+00> : vector<16x32xf32>
    %4 = tpu.matmul %2, %3, %cst_5 {dimension_numbers = #tpu.dot_dimension_numbers<[1], [0], [0], [1], [0, 0, 1, 1], [], []>} : vector<16x128xf32>, vector<128x32xf32>, vector<16x32xf32> -> vector<16x32xf32>
    %c0_6 = arith.constant 0 : index
    %c0_7 = arith.constant 0 : index
    %5 = vector.load %arg4[%c0_6, %c0_7] : memref<16x32xf32, #tpu.memory_space<vmem>>, vector<16x32xf32>
    tpu.vector_store %arg4[%c0_6, %c0_7], %4 {strides = array<i32>} : memref<16x32xf32, #tpu.memory_space<vmem>>, vector<16x32xf32>,
    return
  }
  func.func @transform_0(%arg0: i32) -> (i32, i32) {
    %c0_i32 = arith.constant 0 : i32
    %c0_i32_0 = arith.constant 0 : i32
    return %arg0, %c0_i32 : i32, i32
  }
  func.func @transform_1(%arg0: i32) -> (i32, i32) {
    %c0_i32 = arith.constant 0 : i32
    %c0_i32_0 = arith.constant 0 : i32
    %c0_i32_1 = arith.constant 0 : i32
    return %c0_i32, %c0_i32_0 : i32, i32
  }
  func.func @transform_2(%arg0: i32) -> (i32, i32) {
    %c0_i32 = arith.constant 0 : i32
    %c0_i32_0 = arith.constant 0 : i32
    %c0_i32_1 = arith.constant 0 : i32
    return %c0_i32, %c0_i32_0 : i32, i32
  }
  func.func @transform_3(%arg0: i32) -> (i32, i32) {
    %c0_i32 = arith.constant 0 : i32
    %c0_i32_0 = arith.constant 0 : i32
    return %arg0, %c0_i32 : i32, i32
  }
}

</mosaic_0001>

<bundles_post_ra>
// kernel: tpu_custom_call.1
= control target key start
LH: loop header
LB: loop body
LE: loop exit
PB: predicated region body
PF: predicated region fallthrough
CT: control target
= control target key end

     0   :  { %vm21_vm0 = vcmask 261120   ;;  %s456_s0 = inlined_call_operand.vmem [shape: f32[16,32], index: 0, kind: input, shape index: {}]   ;;  %s457_s1 = inlined_call_operand.vmem [shape: f32[32,128], index: 1, kind: input, shape index: {}]   ;;  %s458_s2 = inlined_call_operand.vmem [shape: f32[128,32], index: 2, kind: input, shape index: {}]   ;;  %s459_s3 = inlined_call_operand.hbm [shape: f32[16,32], index: 3, kind: output, shape index: {}]  }
   0x1   :  { %v17_v0 = vld [vmem:[%s457_s1] sm:$0xff]  ;;  %v18_v1 = vld [vmem:[%s457_s1 + $0x8] sm:$0xff]  ;;  %v19_v2 = vld [vmem:[%s457_s1 + $0x10] sm:$0xff] }
   0x2   :  { %v284_v3 = vpack.c.bf16 %v18_v1, %v17_v0  ;;  %v20_v4 = vld [vmem:[%s457_s1 + $0x18] sm:$0xff]  ;;  %v15_v5 = vld [vmem:[%s456_s0] sm:$0xff]  ;;  %v104_v8 = vld [vmem:[%s458_s2 + $0x8] sm:$0xff] }
   0x3   :  { %v288_v6 = vpack.c.bf16 %v20_v4, %v19_v2  ;;  %246 = vmatprep.mubr.msk.f32.mxu0 %vm21_vm0, %v15_v5  ;;  %v103_v7 = vld [vmem:[%s458_s2] sm:$0xff]  ;;  %v105_v9 = vld [vmem:[%s458_s2 + $0x10] sm:$0xff]  ;;  %v106_v11 = vld [vmem:[%s458_s2 + $0x18] sm:$0xff] }
   0x4   :  { %285 = vmatprep.subr.bf16.mxu0 %v284_v3  ;;  %v292_v10 = vpack.c.bf16 %v104_v8, %v103_v7  ;;  %v296_v12 = vpack.c.bf16 %v106_v11, %v105_v9  ;;  %v107_v13 = vld [vmem:[%s458_s2 + $0x20] sm:$0xff]  ;;  %v108_v14 = vld [vmem:[%s458_s2 + $0x28] sm:$0xff] }
   0x5   :  { %287 = vmatpush3.bf16.msra.mxu0 %v284_v3  ;;  %v300_v15 = vpack.c.bf16 %v108_v14, %v107_v13 }
   0x6   :  { %289 = vmatprep.subr.bf16.mxu0 %v288_v6  ;;  %293 = vmatprep.subr.bf16.mxu1 %v292_v10 }
   0x7   :  { %295 = vmatpush3.bf16.msra.mxu1 %v292_v10 }
   0x8   :  { %297 = vmatprep.subr.bf16.mxu1 %v296_v12 }
   0x9   :  { %8 = vsyncpa [#allocation3], 0  ;;  %291 = vmatpush3.bf16.msra.mxu0 %v288_v6  ;;  %v16_v16 = vld [vmem:[%s456_s0 + $0x8] sm:$0xff]  ;;  %v109_v17 = vld [vmem:[%s458_s2 + $0x30] sm:$0xff]  ;;  %s351_s27 = smov [#allocation2]  }
   0xa   :  { %v110_v18 = vld [vmem:[%s458_s2 + $0x38] sm:$0xff]  ;;  %v111_v20 = vld [vmem:[%s458_s2 + $0x40] sm:$0xff]  ;;  %v112_v21 = vld [vmem:[%s458_s2 + $0x48] sm:$0xff]  ;;  %s201_s1 = sshll.u32 %s351_s27, 4  ;;  %s202_s1 = int_to_ptr.vmem [resolvable:$true] %s201_s1 }
   0xb   :  { %299 = vmatpush3.bf16.msra.mxu1 %v296_v12  ;;  %v304_v19 = vpack.c.bf16 %v110_v18, %v109_v17  ;;  %v308_v22 = vpack.c.bf16 %v112_v21, %v111_v20  ;;  %v113_v23 = vld [vmem:[%s458_s2 + $0x50] sm:$0xff]  ;;  %v114_v24 = vld [vmem:[%s458_s2 + $0x58] sm:$0xff]  ;;  %v115_v26 = vld [vmem:[%s458_s2 + $0x60] sm:$0xff]  ;;  %p332_p1 = scmp.lt.s32.totalorder %s202_s1, %s202_s1 }
   0xc   :  { %247 = vmatmul.mubr.msk.f32.vlgmr.msra.gmra.mrb[0].mxu0 %vm21_vm0, %v16_v16  ;;  %301 = vmatprep.subr.bf16.mxu1 %v300_v15  ;;  %v312_v25 = vpack.c.bf16 %v114_v24, %v113_v23  ;;  %v116_v27 = vld [vmem:[%s458_s2 + $0x68] sm:$0xff]  ;;  %v117_v29 = vld [vmem:[%s458_s2 + $0x70] sm:$0xff]  ;;  %v118_v30 = vld [vmem:[%s458_s2 + $0x78] sm:$0xff]  ;;  %s327_s2 = scalar_lea.vmem %s202_s1, 256 }
   0xd   :  { %v316_v28 = vpack.c.bf16 %v116_v27, %v115_v26  ;;  %v320_v31 = vpack.c.bf16 %v118_v30, %v117_v29  ;;  %p328_p0 = scmp.ne.s32.totalorder %s202_s1, %s327_s2  ;;  %p333_p2 = scmp.lt.s32.totalorder %s327_s2, %s327_s2 }
   0xf   :  { %303 = vmatpush3.bf16.msra.mxu1 %v300_v15  ;;  %p334_p3 = por %p333_p2, %p332_p1 }
  0x10   :  { %305 = vmatprep.subr.bf16.mxu1 %v304_v19 }
  0x11   :  { %p335_p4 = pnand %p334_p3, %p328_p0 }
  0x13   :  { %307 = vmatpush3.bf16.msra.mxu1 %v304_v19 }
  0x14   :  { %309 = vmatprep.subr.bf16.mxu1 %v308_v22 }
  0x17   :  { %311 = vmatpush3.bf16.msra.mxu1 %v308_v22 }
  0x18   :  { %313 = vmatprep.subr.bf16.mxu1 %v312_v25 }
  0x1b   :  { %315 = vmatpush3.bf16.msra.mxu1 %v312_v25 }
  0x1c   :  { %317 = vmatprep.subr.bf16.mxu1 %v316_v28 }
  0x1f   :  { %319 = vmatpush3.bf16.msra.mxu1 %v316_v28 }
  0x20   :  { %321 = vmatprep.subr.bf16.mxu1 %v320_v31 }
  0x23   :  { %323 = vmatpush3.bf16.msra.mxu1 %v320_v31 }
  0xdf   :  { %v248_v32 = vpop.f32.mrb[0].mxu0 }
  0xe0   :  { %v94_v33 = vpop.f32.mrb[1].mxu0 }
  0xe1   :  { %281 = vmatprep.mubr.f32.mxu1 %v94_v33 }
  0xe2   :  { %282 = vmatmul.mubr.f32.vlgmr.msra.gmra.mrb[0].mxu1 %v248_v32 }
 0x1b5   :  { %v283_v34 = vpop.f32.mrb[0].mxu1 }
 0x1b6   :  { %195 = vst.msk [vmem:[#allocation2 + $0x8] sm:$0xff] %vm21_vm0, %v283_v34  ;;  %v185_v35 = vpop.f32.mrb[1].mxu1 }
 0x1b7   :  { %194 = vst.msk [vmem:[#allocation2] sm:$0xff] %vm21_vm0, %v185_v35 }
 0x1b8   :  { %338 = shalt.err (!%p335_p4)
}
 0x1b9   :  { %s339_s30 = scalar_lea.hbm %s459_s3, 256 }
 0x1ba   :  { %p340_p5 = scmp.ne.s32.totalorder %s459_s3, %s339_s30  ;;  %p343_p6 = scmp.lt.u32.totalorder %s339_s30, %s459_s3 }
 0x1bc   :  { %p345_p7 = pnand %p343_p6, %p340_p5 }
 0x1be   :  { %348 = shalt.err (!%p345_p7)
}
 0x1bf   :  { %s352_s8 = smov 128   ;;  %s353_s9 = smov 8  }
 0x1c0   :  { %207 = dma.vmem_to_hbm [thread:$0]  %s202_s1, 256, %s459_s3, [#allocation3], %s352_s8, %s352_s8, %s353_s9  }
 0x1c1   :  { %349 = dma.done.wait [#allocation3], 256  }
 0x1c2   :  { %350 = vsyncadd [#allocation3], 4294967040 }
 0x1c3   :  { %211 = vsyncpa [#allocation3], 1 }

</bundles_post_ra>
